<compile_context>
chip_gen: v7x
topology: tpu7x:2x2x1
jax: 0.10.0
libtpu: 0.0.40
codegen_flags: <defaults>
</compile_context>

<pallas_src>
import jax
import jax.numpy as jnp
from jax.experimental import pallas as pl
from jax.experimental.pallas import tpu as pltpu

IN_F, HID, OUT_F = 4, 8, 4
FP = 8                      # feature dim padded to one sublane tile
SLAB_W = 128                # packed-parameter slab width (one lane tile)
LANE = 128
MAX_BLOCK_B = 131072        # default batch (lane) tile; ~12 MiB VMEM double-buffered
VMEM_LIMIT_BYTES = 32 * 1024 * 1024


def mlp_kernel(p_ref, x_ref, o_ref):
    # p_ref: (8, 128) packed params (VMEM-resident, constant index_map)
    # x_ref: (8, TB)  feature-major activations, batch on lanes (rows 4:8 zero)
    # o_ref: (4, TB)  feature-major outputs, batch on lanes
    x = x_ref[...]

    w1 = p_ref[:, 0:8]       # (8,8): cols 0:4 = W1, cols 4:8 = 0 (input pad)
    b1 = p_ref[:, 8:9]       # (8,1)
    w2 = p_ref[:, 16:24]     # (8,8)
    b2 = p_ref[:, 24:25]     # (8,1)
    w3 = p_ref[:, 32:40]     # (8,8): rows 0:4 = W3, rows 4:8 = 0 (output pad)
    b3 = p_ref[:, 40:41]     # (8,1): rows 0:4 = b3

    h1 = jnp.maximum(jnp.dot(w1, x, preferred_element_type=jnp.float32) + b1, 0.0)
    h2 = jnp.maximum(jnp.dot(w2, h1, preferred_element_type=jnp.float32) + b2, 0.0)
    y = jnp.dot(w3, h2, preferred_element_type=jnp.float32) + b3
    o_ref[...] = y[:OUT_F, :].astype(o_ref.dtype)   # store only the 4 real rows


def pack_params(params):
    """Pack W1,b1,W2,b2,W3,b3 (PyTorch shapes) into one (8,128) f32 slab."""
    w1, b1, w2, b2, w3, b3 = params
    slab = jnp.zeros((FP, SLAB_W), jnp.float32)
    slab = slab.at[:, 0:IN_F].set(w1)        # W1 (8,4); cols 4:8 stay zero
    slab = slab.at[:, 8].set(b1)             # b1 (8,)
    slab = slab.at[:, 16:24].set(w2)         # W2 (8,8)
    slab = slab.at[:, 24].set(b2)            # b2 (8,)
    slab = slab.at[:OUT_F, 32:40].set(w3)    # W3 (4,8); rows 4:8 stay zero
    slab = slab.at[:OUT_F, 40].set(b3)       # b3 (4,)
    return slab


def _mlp_pallas_call(xt, packed_params, TB):
    """xt: (8, Bp) feature-major, Bp % TB == 0. Returns (4, Bp) feature-major."""
    fp, Bp = xt.shape
    assert fp == FP and Bp % TB == 0 and TB % LANE == 0
    grid = (Bp // TB,)

    flops = 3 * 2 * FP * FP * Bp
    bytes_accessed = (FP * Bp + OUT_F * Bp + FP * SLAB_W) * 4
    cost = pl.CostEstimate(flops=flops, transcendentals=0,
                           bytes_accessed=bytes_accessed)

    return pl.pallas_call(
        mlp_kernel,
        out_shape=jax.ShapeDtypeStruct((OUT_F, Bp), xt.dtype),
        grid=grid,
        in_specs=[
            pl.BlockSpec((FP, SLAB_W), lambda i: (0, 0)),   # params, VMEM-resident
            pl.BlockSpec((FP, TB), lambda i: (0, i)),       # x tile (batch on lanes)
        ],
        out_specs=pl.BlockSpec((OUT_F, TB), lambda i: (0, i)),
        compiler_params=pltpu.CompilerParams(
            dimension_semantics=("parallel",),              # shard B over v7x's 2 TCs
            vmem_limit_bytes=VMEM_LIMIT_BYTES,
        ),
        cost_estimate=cost,
    )(packed_params, xt)


def mlp_forward_feature_major(xt, packed_params, *, max_block_b=MAX_BLOCK_B):
    """Fast path: activations kept feature-major end-to-end.

    xt: (8, Bp) f32 with rows 0:4 = features, rows 4:8 = 0, batch on the lane
    axis; Bp must be a multiple of 128 and of min(max_block_b, Bp).
    Returns (4, Bp).  No extra HBM passes: x is read exactly once.
    """
    fp, Bp = xt.shape
    TB = Bp if Bp <= max_block_b else max_block_b
    assert Bp % TB == 0, "pad batch to a multiple of max_block_b for the fast path"
    return _mlp_pallas_call(xt, packed_params, TB)


def mlp_forward(x, packed_params, *, max_block_b=MAX_BLOCK_B):
    """Module-compatible wrapper: x (B, 4) -> (B, 4)."""
    B, fin = x.shape
    assert fin == IN_F

    TB = min(max_block_b, pl.cdiv(B, LANE) * LANE)   # lane-aligned batch tile
    Bp = pl.cdiv(B, TB) * TB

    # Layout plumbing (one XLA transpose/pad pass). Callers that can keep
    # activations feature-major should use mlp_forward_feature_major instead.
    xt = jnp.zeros((FP, Bp), x.dtype).at[:IN_F, :B].set(x.T)

    yt = _mlp_pallas_call(xt, packed_params, TB)     # (4, Bp)
    return yt[:, :B].T                               # back to (B, 4)


def init_params(key):
    # PyTorch nn.Linear shapes: W (out, in), b (out,), init U(-1/sqrt(fan_in), +).
    ks = jax.random.split(key, 6)

    def u(k, fan_in, shape):
        bound = 1.0 / jnp.sqrt(fan_in)
        return jax.random.uniform(k, shape, jnp.float32, -bound, bound)

    w1 = u(ks[0], IN_F, (HID, IN_F))
    b1 = u(ks[1], IN_F, (HID,))
    w2 = u(ks[2], HID, (HID, HID))
    b2 = u(ks[3], HID, (HID,))
    w3 = u(ks[4], HID, (OUT_F, HID))
    b3 = u(ks[5], HID, (OUT_F,))
    return (w1, b1, w2, b2, w3, b3)


def reference_forward(x, params):
    w1, b1, w2, b2, w3, b3 = params
    h1 = jnp.maximum(x @ w1.T + b1, 0.0)
    h2 = jnp.maximum(h1 @ w2.T + b2, 0.0)
    return h2 @ w3.T + b3


if __name__ == "__main__":
    key = jax.random.PRNGKey(0)
    k_params, k_x = jax.random.split(key)
    params = init_params(k_params)
    slab = pack_params(params)

    B = 8  # small demo batch; tiling scales transparently to large B
    x = jax.random.normal(k_x, (B, IN_F), jnp.float32)

    out = mlp_forward(x, slab)
    out = jax.block_until_ready(out)

    ref = reference_forward(x, params)
    assert out.shape == (B, OUT_F)
    assert jnp.allclose(out, ref, atol=1e-5, rtol=1e-5)

    print("KERNEL_OK")
</pallas_src>

<mosaic_0001>
module attributes {stable_mosaic.version = 11 : i64} {
  func.func @mlp_kernel(%arg0: i32, %arg1: memref<8x128xf32, #tpu.memory_space<vmem>>, %arg2: memref<8x128xf32, #tpu.memory_space<vmem>>, %arg3: memref<4x128xf32, #tpu.memory_space<vmem>>) attributes {dimension_semantics = [#tpu.dimension_semantics<parallel>], iteration_bounds = array<i64: 1>, scalar_prefetch = 0 : i64, scratch_operands = 0 : i64, tpu.core_type = #tpu.core_type<tc>, window_params = [{pipeline_mode = #tpu.pipeline_mode<synchronous>, transform_indices = @transform_0, window_bounds = array<i64: 8, 128>}, {transform_indices = @transform_1, window_bounds = array<i64: 8, 128>}, {transform_indices = @transform_2, window_bounds = array<i64: 4, 128>}]} {
    %c0 = arith.constant 0 : index
    %c0_0 = arith.constant 0 : index
    %0 = vector.load %arg2[%c0, %c0_0] : memref<8x128xf32, #tpu.memory_space<vmem>>, vector<8x128xf32>
    %c0_1 = arith.constant 0 : index
    %c0_2 = arith.constant 0 : index
    %1 = vector.load %arg1[%c0_1, %c0_2] : memref<8x128xf32, #tpu.memory_space<vmem>>, vector<8x8xf32>
    %c0_3 = arith.constant 0 : index
    %c8 = arith.constant 8 : index
    %2 = vector.load %arg1[%c0_3, %c8] : memref<8x128xf32, #tpu.memory_space<vmem>>, vector<8x1xf32>
    %c0_4 = arith.constant 0 : index
    %c16 = arith.constant 16 : index
    %3 = vector.load %arg1[%c0_4, %c16] : memref<8x128xf32, #tpu.memory_space<vmem>>, vector<8x8xf32>
    %c0_5 = arith.constant 0 : index
    %c24 = arith.constant 24 : index
    %4 = vector.load %arg1[%c0_5, %c24] : memref<8x128xf32, #tpu.memory_space<vmem>>, vector<8x1xf32>
    %c0_6 = arith.constant 0 : index
    %c32 = arith.constant 32 : index
    %5 = vector.load %arg1[%c0_6, %c32] : memref<8x128xf32, #tpu.memory_space<vmem>>, vector<8x8xf32>
    %c0_7 = arith.constant 0 : index
    %c40 = arith.constant 40 : index
    %6 = vector.load %arg1[%c0_7, %c40] : memref<8x128xf32, #tpu.memory_space<vmem>>, vector<8x1xf32>
    %cst = arith.constant dense<0.000000e+00> : vector<8x128xf32>
    %7 = tpu.matmul %1, %0, %cst {dimension_numbers = #tpu.dot_dimension_numbers<[1], [0], [0], [1], [0, 0, 1, 1], [], []>} : vector<8x8xf32>, vector<8x128xf32>, vector<8x128xf32> -> vector<8x128xf32>
    %8 = vector.broadcast %2 : vector<8x1xf32> to vector<8x128xf32>
    %9 = arith.addf %7, %8 : vector<8x128xf32>
    %cst_8 = arith.constant 0.000000e+00 : f32
    %10 = vector.broadcast %cst_8 : f32 to vector<8x128xf32>
    %11 = arith.maximumf %9, %10 : vector<8x128xf32>
    %cst_9 = arith.constant dense<0.000000e+00> : vector<8x128xf32>
    %12 = tpu.matmul %3, %11, %cst_9 {dimension_numbers = #tpu.dot_dimension_numbers<[1], [0], [0], [1], [0, 0, 1, 1], [], []>} : vector<8x8xf32>, vector<8x128xf32>, vector<8x128xf32> -> vector<8x128xf32>
    %13 = vector.broadcast %4 : vector<8x1xf32> to vector<8x128xf32>
    %14 = arith.addf %12, %13 : vector<8x128xf32>
    %cst_10 = arith.constant 0.000000e+00 : f32
    %15 = vector.broadcast %cst_10 : f32 to vector<8x128xf32>
    %16 = arith.maximumf %14, %15 : vector<8x128xf32>
    %cst_11 = arith.constant dense<0.000000e+00> : vector<8x128xf32>
    %17 = tpu.matmul %5, %16, %cst_11 {dimension_numbers = #tpu.dot_dimension_numbers<[1], [0], [0], [1], [0, 0, 1, 1], [], []>} : vector<8x8xf32>, vector<8x128xf32>, vector<8x128xf32> -> vector<8x128xf32>
    %18 = vector.broadcast %6 : vector<8x1xf32> to vector<8x128xf32>
    %19 = arith.addf %17, %18 : vector<8x128xf32>
    %20 = vector.extract_strided_slice %19 {offsets = [0, 0], sizes = [4, 128], strides = [1, 1]} : vector<8x128xf32> to vector<4x128xf32>
    %c0_12 = arith.constant 0 : index
    %c0_13 = arith.constant 0 : index
    %21 = vector.load %arg3[%c0_12, %c0_13] : memref<4x128xf32, #tpu.memory_space<vmem>>, vector<4x128xf32>
    tpu.vector_store %arg3[%c0_12, %c0_13], %20 {strides = array<i32>} : memref<4x128xf32, #tpu.memory_space<vmem>>, vector<4x128xf32>,
    return
  }
  func.func @transform_0(%arg0: i32) -> (i32, i32) {
    %c0_i32 = arith.constant 0 : i32
    %c0_i32_0 = arith.constant 0 : i32
    %c0_i32_1 = arith.constant 0 : i32
    return %c0_i32, %c0_i32_0 : i32, i32
  }
  func.func @transform_1(%arg0: i32) -> (i32, i32) {
    %c0_i32 = arith.constant 0 : i32
    %c0_i32_0 = arith.constant 0 : i32
    return %c0_i32, %arg0 : i32, i32
  }
  func.func @transform_2(%arg0: i32) -> (i32, i32) {
    %c0_i32 = arith.constant 0 : i32
    %c0_i32_0 = arith.constant 0 : i32
    return %c0_i32, %arg0 : i32, i32
  }
}

</mosaic_0001>

<bundles_post_ra>
// kernel: tpu_custom_call.1
= control target key start
LH: loop header
LB: loop body
LE: loop exit
PB: predicated region body
PF: predicated region fallthrough
CT: control target
= control target key end

     0   :  { %7 = vsyncpa [#allocation3], 0  ;;  %s464_s0 = inlined_call_operand.hbm [shape: f32[8,128], index: 0, kind: input, shape index: {}]   ;;  %s465_s1 = inlined_call_operand.hbm [shape: f32[8,128], index: 1, kind: input, shape index: {}]   ;;  %s466_s2 = inlined_call_operand.hbm [shape: f32[4,128], index: 2, kind: output, shape index: {}]  }
   0x1   :  { %8 = vsyncpa [#allocation6], 0 }
   0x2   :  { %9 = vsyncpa [#allocation4], 0  ;;  %s400_s9 = smov [#allocation2]   ;;  %s401_s11 = smov [#allocation5]  }
   0x3   :  { %s16_s10 = sshll.u32 %s400_s9, 4  ;;  %s26_s12 = sshll.u32 %s401_s11, 4  ;;  %s17_s10 = int_to_ptr.vmem [resolvable:$true] %s16_s10  ;;  %s27_s12 = int_to_ptr.vmem [resolvable:$true] %s26_s12 }
   0x4   :  { %s328_s15 = scalar_lea.hbm %s464_s0, 128 }
   0x5   :  { %p329_p0 = scmp.ne.s32.totalorder %s464_s0, %s328_s15  ;;  %p332_p1 = scmp.lt.u32.totalorder %s328_s15, %s464_s0 }
   0x7   :  { %p334_p2 = pnand %p332_p1, %p329_p0 }
   0x9   :  { %337 = shalt.err (!%p334_p2)
}
   0xa   :  { %s338_s20 = scalar_lea.vmem %s17_s10, 128  ;;  %p343_p4 = scmp.lt.s32.totalorder %s17_s10, %s17_s10 }
   0xb   :  { %p339_p3 = scmp.ne.s32.totalorder %s17_s10, %s338_s20  ;;  %p344_p5 = scmp.lt.s32.totalorder %s338_s20, %s338_s20 }
   0xd   :  { %p345_p6 = por %p344_p5, %p343_p4 }
   0xf   :  { %p346_p7 = pnand %p345_p6, %p339_p3 }
  0x11   :  { %349 = shalt.err (!%p346_p7)
}
  0x12   :  { %19 = dma.hbm_to_vmem [thread:$0]  %s464_s0, 128, %s17_s10, [#allocation3]  }
  0x13   :  { %s350_s25 = scalar_lea.hbm %s465_s1, 128 }
  0x14   :  { %p351_p8 = scmp.ne.s32.totalorder %s465_s1, %s350_s25  ;;  %p354_p9 = scmp.lt.u32.totalorder %s350_s25, %s465_s1 }
  0x16   :  { %p356_p10 = pnand %p354_p9, %p351_p8 }
  0x18   :  { %359 = shalt.err (!%p356_p10)
}
  0x19   :  { %s360_s30 = scalar_lea.vmem %s27_s12, 128  ;;  %p365_p12 = scmp.lt.s32.totalorder %s27_s12, %s27_s12 }
  0x1a   :  { %p361_p11 = scmp.ne.s32.totalorder %s27_s12, %s360_s30  ;;  %p366_p13 = scmp.lt.s32.totalorder %s360_s30, %s360_s30 }
  0x1c   :  { %p367_p0 = por %p366_p13, %p365_p12 }
  0x1e   :  { %p368_p1 = pnand %p367_p0, %p361_p11 }
  0x20   :  { %371 = shalt.err (!%p368_p1)
}
  0x21   :  { %29 = dma.hbm_to_vmem [thread:$0]  %s465_s1, 128, %s27_s12, [#allocation6]  }
  0x22   :  { %394 = dma.done.wait [#allocation3], 128  }
  0x23   :  { %395 = vsyncadd [#allocation3], 4294967168 }
  0x24   :  { %396 = dma.done.wait [#allocation6], 128  }
  0x25   :  { %397 = vsyncadd [#allocation6], 4294967168  ;;  %v402_v0 = vmov 0.0   ;;  %vm403_vm0 = vmmov 0   ;;  %v404_v1 = vmov 8   ;;  %vm43_vm1 = vcmask 64512  }
  0x26   :  { %300 = vmatprep.subr.mxu0 %v402_v0  ;;  %302 = vmatprep.mubr.msk.f32.mxu0 %vm403_vm0, %v402_v0  ;;  %v36_v2 = vld [vmem:[#allocation5] sm:$0xff]  ;;  %v37_v3 = vld [vmem:[#allocation2] sm:$0xff]  ;;  %s405_s1 = smov 112   ;;  %v406_v4 = vmov 24   ;;  %s407_s4 = smov 96   ;;  %v408_v11 = vmov 40  }
  0x27   :  { %325 = vset.pattern.permute.xlu0 %v404_v1  ;;  %305 = vmatprep.subr.mxu1 %v402_v0  ;;  %s409_s5 = smov [#allocation7]  }
  0x28   :  { %307 = vmatprep.mubr.msk.f32.mxu1 %vm403_vm0, %v402_v0  ;;  %301 = vmatpush3.msra.mxu0 %v36_v2  ;;  %s281_s6 = sshll.u32 %s409_s5, 4  ;;  %s282_s6 = int_to_ptr.vmem [resolvable:$true] %s281_s6 }
  0x29   :  { %40 = vperm.xlu0 %325, %v37_v3   ;;  %303 = vmatmul.mubr.msk.f32.vlgmr.msra.gmra.mrb[0].mxu0 %vm43_vm1, %v37_v3  ;;  %s372_s7 = scalar_lea.vmem %s282_s6, 64  ;;  %p377_p3 = scmp.lt.s32.totalorder %s282_s6, %s282_s6 }
  0x2a   :  { %310 = vmatprep.subr.mxu0 %v402_v0  ;;  %312 = vmatprep.mubr.msk.f32.mxu0 %vm403_vm0, %v402_v0  ;;  %p373_p2 = scmp.ne.s32.totalorder %s282_s6, %s372_s7  ;;  %p378_p4 = scmp.lt.s32.totalorder %s372_s7, %s372_s7 }
  0x2b   :  { %326 = vset.pattern.permute.xlu1 %v406_v4 }
  0x2c   :  { %118 = vperm.xlu1 %326, %v37_v3   ;;  %p379_p5 = por %p378_p4, %p377_p3 }
  0x2d   :  { %121 = vrot.lane.b32.xlu0 %v37_v3, %s405_s1 }
  0x2e   :  { %327 = vset.pattern.permute.xlu0 %v408_v11  ;;  %p380_p6 = pnand %p379_p5, %p373_p2 }
  0x30   :  { %200 = vrot.lane.b32.xlu1 %v37_v3, %s407_s4 }
  0x31   :  { %197 = vperm.xlu0 %327, %v37_v3  }
  0xa8   :  { %v41_v5 = vpop.permute.xlu0 %40 }
  0xab   :  { %v119_v12 = vpop.permute.xlu1 %118 }
  0xac   :  { %v122_v10 = vpop.permute.xlu0 %121 }
  0xaf   :  { %v201_v17 = vpop.permute.xlu1 %200 }
  0xb0   :  { %v198_v18 = vpop.permute.xlu0 %197 }
  0xfc   :  { %v112_v6 = vpop.f32.mrb[0].mxu0 }
  0xfd   :  { %v113_v7 = vadd.f32 %v112_v6, %v41_v5  ;;  %v304_v8 = vpop.f32.mrb[1].mxu0 }
  0xff   :  { %v116_v9 = vmax.f32 %v113_v7, 0.0 }
 0x101   :  { %306 = vmatpush3.msra.mxu1 %v116_v9 }
 0x102   :  { %308 = vmatmul.mubr.msk.f32.vlgmr.msra.gmra.mrb[0].mxu1 %vm43_vm1, %v122_v10 }
 0x1d5   :  { %v191_v13 = vpop.f32.mrb[0].mxu1 }
 0x1d6   :  { %v192_v14 = vadd.f32 %v191_v13, %v119_v12  ;;  %v309_v15 = vpop.f32.mrb[1].mxu1 }
 0x1d8   :  { %v195_v16 = vmax.f32 %v192_v14, 0.0 }
 0x1da   :  { %311 = vmatpush3.msra.mxu0 %v195_v16 }
 0x1db   :  { %313 = vmatmul.mubr.msk.f32.vlgmr.msra.gmra.mrb[2].mxu0 %vm43_vm1, %v201_v17 }
 0x2ae   :  { %v270_v19 = vpop.f32.mrb[2].mxu0 }
 0x2af   :  { %v271_v20 = vadd.f32 %v270_v19, %v198_v18  ;;  %v314_v21 = vpop.f32.mrb[3].mxu0 }
 0x2b1   :  { %274 = vst [vmem:[#allocation7] sm:$0xf] %v271_v20 }
 0x2b2   :  { %383 = shalt.err (!%p380_p6)
}
 0x2b3   :  { %s384_s10 = scalar_lea.hbm %s466_s2, 64 }
 0x2b4   :  { %p385_p7 = scmp.ne.s32.totalorder %s466_s2, %s384_s10  ;;  %p388_p8 = scmp.lt.u32.totalorder %s384_s10, %s466_s2 }
 0x2b6   :  { %p390_p9 = pnand %p388_p8, %p385_p7 }
 0x2b8   :  { %393 = shalt.err (!%p390_p9)
}
 0x2b9   :  { %284 = dma.vmem_to_hbm [thread:$0]  %s282_s6, 64, %s466_s2, [#allocation4]  }
 0x2ba   :  { %398 = dma.done.wait [#allocation4], 64  }
 0x2bb   :  { %399 = vsyncadd [#allocation4], 4294967232 }
 0x2bc   :  { %288 = vsyncpa [#allocation3], 1 }
 0x2bd   :  { %289 = vsyncpa [#allocation6], 1 }
 0x2be   :  { %290 = vsyncpa [#allocation4], 1 }

</bundles_post_ra>
